<compile_context>
chip_gen: v7x
topology: tpu7x:2x2x1
jax: 0.10.0
libtpu: 0.0.40
codegen_flags: <defaults>
</compile_context>

<pallas_src>
import functools

import jax
import jax.numpy as jnp
from jax.experimental import pallas as pl
from jax.experimental.pallas import tpu as pltpu

NUM_ANGLES = 45
SINOGRAM_SIZE = 41 * NUM_ANGLES   # 1845
HIDDEN = 128
NUM_CLASSES = 10
CLASSES_PAD = 128                 # lane-dense output width


def _round_up(x, m):
    return (x + m - 1) // m * m


def _cdiv(a, b):
    return -(-a // b)


def _mlp_kernel(x_ref, w1_ref, b1_ref, w2_ref, b2_ref, o_ref):
    # x_ref:  [TB, 1845] f32 (cast to bf16 here; hidden under the x DMA)
    # w1_ref: [1845, 128] bf16,  b1_ref: [1, 128] f32
    # w2_ref: [128, 128]  bf16,  b2_ref: [1, 128] f32 (classes zero-padded)
    # o_ref:  [TB, 128]   f32
    x = x_ref[...].astype(jnp.bfloat16)
    h = jnp.dot(x, w1_ref[...], preferred_element_type=jnp.float32)
    h = jnp.maximum(h + b1_ref[...], 0.0)                       # ReLU
    out = jnp.dot(h.astype(jnp.bfloat16), w2_ref[...],
                  preferred_element_type=jnp.float32)
    o_ref[...] = out + b2_ref[...]


def _choose_tiling(batch, max_tile_b):
    """(tile_b, padded_b, n_tiles): minimal padding, even tile count when possible."""
    b8 = _round_up(batch, 8)
    n_tiles = max(1, _cdiv(b8, max(8, _round_up(max_tile_b, 8))))
    # Even tile count shards evenly across v7x's 2 TensorCores (harmless elsewhere).
    if n_tiles % 2 == 1 and b8 > 8:
        n_tiles += 1
    tile_b = _round_up(_cdiv(b8, n_tiles), 8)
    return tile_b, tile_b * n_tiles, n_tiles


@functools.partial(jax.jit, static_argnames=("tile_b",))
def sinogram_nn_forward(x, w1, b1, w2, b2, *, tile_b=1024):
    """x: [B, 41, num_angles]; weights stored [in, out]. Returns [B, 10] f32."""
    B = x.shape[0]

    # nn.Flatten — no K padding, no wrapper-side cast of the big x stream.
    x_flat = x.reshape(B, -1)
    K = x_flat.shape[1]

    # Resident operands: bf16 matmul weights, f32 biases; classes padded to 128 lanes.
    w1_bf16 = w1.astype(jnp.bfloat16)
    w2_bf16 = jnp.pad(w2, ((0, 0), (0, CLASSES_PAD - NUM_CLASSES))).astype(jnp.bfloat16)
    b2_p = jnp.pad(b2, ((0, 0), (0, CLASSES_PAD - NUM_CLASSES)))

    # Batch tiling: minimize padding, keep tile count even.
    tb, padded_b, n_tiles = _choose_tiling(B, tile_b)
    if padded_b != B:
        x_flat = jnp.pad(x_flat, ((0, padded_b - B), (0, 0)))

    x_bytes = x_flat.dtype.itemsize
    cost = pl.CostEstimate(
        flops=2 * padded_b * K * HIDDEN + 2 * padded_b * HIDDEN * CLASSES_PAD,
        transcendentals=0,
        bytes_accessed=(padded_b * K * x_bytes          # x stream
                        + K * HIDDEN * 2                # W1 (bf16)
                        + HIDDEN * 4                    # b1
                        + HIDDEN * CLASSES_PAD * 2      # W2 (bf16)
                        + CLASSES_PAD * 4               # b2
                        + padded_b * CLASSES_PAD * 4),  # out
    )

    # Scoped-VMEM: double-buffered x/out tiles + (default double-buffered) weights.
    vmem_need = 2 * (tb * K * x_bytes
                     + tb * CLASSES_PAD * 4
                     + K * HIDDEN * 2 + HIDDEN * 4
                     + HIDDEN * CLASSES_PAD * 2 + CLASSES_PAD * 4)
    vmem_limit = int(min(vmem_need + (8 << 20), 96 << 20))

    out = pl.pallas_call(
        _mlp_kernel,
        out_shape=jax.ShapeDtypeStruct((padded_b, CLASSES_PAD), jnp.float32),
        grid_spec=pltpu.PrefetchScalarGridSpec(
            num_scalar_prefetch=0,
            grid=(n_tiles,),
            in_specs=[
                pl.BlockSpec((tb, K), lambda i: (i, 0)),                # x tile (K = full dim)
                pl.BlockSpec((K, HIDDEN), lambda i: (0, 0)),            # W1 (resident)
                pl.BlockSpec((1, HIDDEN), lambda i: (0, 0)),            # b1
                pl.BlockSpec((HIDDEN, CLASSES_PAD), lambda i: (0, 0)),  # W2 (padded, resident)
                pl.BlockSpec((1, CLASSES_PAD), lambda i: (0, 0)),       # b2 (padded)
            ],
            out_specs=pl.BlockSpec((tb, CLASSES_PAD), lambda i: (i, 0)),
        ),
        compiler_params=pltpu.CompilerParams(
            dimension_semantics=("parallel",),
            vmem_limit_bytes=vmem_limit,
        ),
        cost_estimate=cost,
    )(x_flat, w1_bf16, b1, w2_bf16, b2_p)

    return out[:B, :NUM_CLASSES]


def init_params(key):
    """Mirror nn.Linear's U(-1/sqrt(fan_in), +1/sqrt(fan_in)); stored [in, out]."""
    k1, k2, k3, k4 = jax.random.split(key, 4)
    bound1 = 1.0 / jnp.sqrt(jnp.float32(SINOGRAM_SIZE))
    bound2 = 1.0 / jnp.sqrt(jnp.float32(HIDDEN))
    w1 = jax.random.uniform(k1, (SINOGRAM_SIZE, HIDDEN), jnp.float32, -bound1, bound1)
    b1 = jax.random.uniform(k2, (1, HIDDEN), jnp.float32, -bound1, bound1)
    w2 = jax.random.uniform(k3, (HIDDEN, NUM_CLASSES), jnp.float32, -bound2, bound2)
    b2 = jax.random.uniform(k4, (1, NUM_CLASSES), jnp.float32, -bound2, bound2)
    return w1, b1, w2, b2


def reference_forward(x, w1, b1, w2, b2):
    x_flat = x.reshape(x.shape[0], -1)
    h = jnp.maximum(x_flat @ w1 + b1, 0.0)
    return h @ w2 + b2


if __name__ == "__main__":
    key = jax.random.PRNGKey(0)
    kx, kp = jax.random.split(key)
    w1, b1, w2, b2 = init_params(kp)

    # Reference mirrors the kernel's bf16 quantization of x / W1 / W2 (f32 accumulation),
    # so only accumulation-order differences remain.
    w1_q = w1.astype(jnp.bfloat16).astype(jnp.float32)
    w2_q = w2.astype(jnp.bfloat16).astype(jnp.float32)

    def check(batch, tile_b):
        x = jax.random.normal(jax.random.fold_in(kx, batch),
                              (batch, 41, NUM_ANGLES), jnp.float32)
        logits = jax.block_until_ready(
            sinogram_nn_forward(x, w1, b1, w2, b2, tile_b=tile_b))
        ref = reference_forward(x.astype(jnp.bfloat16).astype(jnp.float32),
                                w1_q, b1, w2_q, b2)
        assert logits.shape == (batch, NUM_CLASSES)
        assert jnp.allclose(logits, ref, atol=5e-3, rtol=5e-3), f"mismatch at B={batch}"

    check(16, 1024)   # default path: 2 tiles of 8 rows, no batch padding
    check(20, 8)      # odd->even tile-count bump + batch-padding path (4 x 8 rows)

    print("KERNEL_OK")
</pallas_src>

<mosaic_0001>
module attributes {stable_mosaic.version = 11 : i64} {
  func.func @_mlp_kernel(%arg0: i32, %arg1: memref<8x1845xf32, #tpu.memory_space<vmem>>, %arg2: memref<1845x128xbf16, #tpu.memory_space<vmem>>, %arg3: memref<1x128xf32, #tpu.memory_space<vmem>>, %arg4: memref<128x128xbf16, #tpu.memory_space<vmem>>, %arg5: memref<1x128xf32, #tpu.memory_space<vmem>>, %arg6: memref<8x128xf32, #tpu.memory_space<vmem>>) attributes {dimension_semantics = [#tpu.dimension_semantics<parallel>], iteration_bounds = array<i64: 2>, scalar_prefetch = 0 : i64, scratch_operands = 0 : i64, tpu.core_type = #tpu.core_type<tc>, window_params = [{transform_indices = @transform_0, window_bounds = array<i64: 8, 1845>}, {pipeline_mode = #tpu.pipeline_mode<synchronous>, transform_indices = @transform_1, window_bounds = array<i64: 1845, 128>}, {pipeline_mode = #tpu.pipeline_mode<synchronous>, transform_indices = @transform_2, window_bounds = array<i64: 1, 128>}, {pipeline_mode = #tpu.pipeline_mode<synchronous>, transform_indices = @transform_3, window_bounds = array<i64: 128, 128>}, {pipeline_mode = #tpu.pipeline_mode<synchronous>, transform_indices = @transform_4, window_bounds = array<i64: 1, 128>}, {transform_indices = @transform_5, window_bounds = array<i64: 8, 128>}]} {
    %c0 = arith.constant 0 : index
    %c0_0 = arith.constant 0 : index
    %0 = vector.load %arg1[%c0, %c0_0] : memref<8x1845xf32, #tpu.memory_space<vmem>>, vector<8x1845xf32>
    %1 = arith.truncf %0 : vector<8x1845xf32> to vector<8x1845xbf16>
    %c0_1 = arith.constant 0 : index
    %c0_2 = arith.constant 0 : index
    %2 = vector.load %arg2[%c0_1, %c0_2] : memref<1845x128xbf16, #tpu.memory_space<vmem>>, vector<1845x128xbf16>
    %cst = arith.constant dense<0.000000e+00> : vector<8x128xf32>
    %3 = tpu.matmul %1, %2, %cst {dimension_numbers = #tpu.dot_dimension_numbers<[1], [0], [0], [1], [0, 0, 1, 1], [], []>} : vector<8x1845xbf16>, vector<1845x128xbf16>, vector<8x128xf32> -> vector<8x128xf32>
    %c0_3 = arith.constant 0 : index
    %c0_4 = arith.constant 0 : index
    %4 = vector.load %arg3[%c0_3, %c0_4] : memref<1x128xf32, #tpu.memory_space<vmem>>, vector<1x128xf32>
    %5 = vector.broadcast %4 : vector<1x128xf32> to vector<8x128xf32>
    %6 = arith.addf %3, %5 : vector<8x128xf32>
    %cst_5 = arith.constant 0.000000e+00 : f32
    %7 = vector.broadcast %cst_5 : f32 to vector<8x128xf32>
    %8 = arith.maximumf %6, %7 : vector<8x128xf32>
    %9 = arith.truncf %8 : vector<8x128xf32> to vector<8x128xbf16>
    %c0_6 = arith.constant 0 : index
    %c0_7 = arith.constant 0 : index
    %10 = vector.load %arg4[%c0_6, %c0_7] : memref<128x128xbf16, #tpu.memory_space<vmem>>, vector<128x128xbf16>
    %cst_8 = arith.constant dense<0.000000e+00> : vector<8x128xf32>
    %11 = tpu.matmul %9, %10, %cst_8 {dimension_numbers = #tpu.dot_dimension_numbers<[1], [0], [0], [1], [0, 0, 1, 1], [], []>} : vector<8x128xbf16>, vector<128x128xbf16>, vector<8x128xf32> -> vector<8x128xf32>
    %c0_9 = arith.constant 0 : index
    %c0_10 = arith.constant 0 : index
    %12 = vector.load %arg5[%c0_9, %c0_10] : memref<1x128xf32, #tpu.memory_space<vmem>>, vector<1x128xf32>
    %13 = vector.broadcast %12 : vector<1x128xf32> to vector<8x128xf32>
    %14 = arith.addf %11, %13 : vector<8x128xf32>
    %c0_11 = arith.constant 0 : index
    %c0_12 = arith.constant 0 : index
    %15 = vector.load %arg6[%c0_11, %c0_12] : memref<8x128xf32, #tpu.memory_space<vmem>>, vector<8x128xf32>
    tpu.vector_store %arg6[%c0_11, %c0_12], %14 {strides = array<i32>} : memref<8x128xf32, #tpu.memory_space<vmem>>, vector<8x128xf32>,
    return
  }
  func.func @transform_0(%arg0: i32) -> (i32, i32) {
    %c0_i32 = arith.constant 0 : i32
    %c0_i32_0 = arith.constant 0 : i32
    return %arg0, %c0_i32 : i32, i32
  }
  func.func @transform_1(%arg0: i32) -> (i32, i32) {
    %c0_i32 = arith.constant 0 : i32
    %c0_i32_0 = arith.constant 0 : i32
    %c0_i32_1 = arith.constant 0 : i32
    return %c0_i32, %c0_i32_0 : i32, i32
  }
  func.func @transform_2(%arg0: i32) -> (i32, i32) {
    %c0_i32 = arith.constant 0 : i32
    %c0_i32_0 = arith.constant 0 : i32
    %c0_i32_1 = arith.constant 0 : i32
    return %c0_i32, %c0_i32_0 : i32, i32
  }
  func.func @transform_3(%arg0: i32) -> (i32, i32) {
    %c0_i32 = arith.constant 0 : i32
    %c0_i32_0 = arith.constant 0 : i32
    %c0_i32_1 = arith.constant 0 : i32
    return %c0_i32, %c0_i32_0 : i32, i32
  }
  func.func @transform_4(%arg0: i32) -> (i32, i32) {
    %c0_i32 = arith.constant 0 : i32
    %c0_i32_0 = arith.constant 0 : i32
    %c0_i32_1 = arith.constant 0 : i32
    return %c0_i32, %c0_i32_0 : i32, i32
  }
  func.func @transform_5(%arg0: i32) -> (i32, i32) {
    %c0_i32 = arith.constant 0 : i32
    %c0_i32_0 = arith.constant 0 : i32
    return %arg0, %c0_i32 : i32, i32
  }
}

</mosaic_0001>

<bundles_post_ra>
// kernel: sinogram_nn_forward.1
= control target key start
LH: loop header
LB: loop body
LE: loop exit
PB: predicated region body
PF: predicated region fallthrough
CT: control target
= control target key end

     0   :  { %10 = vsyncpa [#allocation3], 0  ;;  %s2816_s0 = inlined_call_operand.vmem [shape: f32[16,1845], index: 0, kind: input, shape index: {}]   ;;  %s2817_s1 = inlined_call_operand.vmem [shape: bf16[1845,128], index: 1, kind: input, shape index: {}]   ;;  %s2818_s2 = inlined_call_operand.vmem [shape: f32[1,128], index: 2, kind: input, shape index: {}]   ;;  %s2819_s3 = inlined_call_operand.vmem [shape: bf16[128,128], index: 3, kind: input, shape index: {}]   ;;  %s2820_s4 = inlined_call_operand.vmem [shape: f32[1,128], index: 4, kind: input, shape index: {}]   ;;  %s2821_s5 = inlined_call_operand.hbm [shape: f32[16,128], index: 5, kind: output, shape index: {}]  }
   0x1   :  { %12 = vsyncpa [#allocation3 + $0x1], 0  ;;  %s2305_s18 = smov 0   ;;  %s2307_s19 = smov 0  }
   0x2   :  { %s2309_s20 = smov 0   ;;  %s2311_s21 = smov 0  }
   0x3 LB: > { %s2326_s22 = sadd.s32 4294967295, %s2269_s21   ;;  %s1703_s23 = sadd.s32 4294967294, %s2269_s21   ;;  %s2269_s21 = sphi %s2311_s21, %s2827_s21   ;;  %s2265_s20 = sphi %s2309_s20, %s2826_s20   ;;  %s2261_s19 = sphi %s2307_s19, %s2825_s19   ;;  %s2257_s18 = sphi %s2305_s18, %s2824_s18  }
   0x4   : > { %s2330_s24 = sadd.s32 1, %s2269_s21   ;;  %s135_s25 = sadd.s32 1, %s2265_s20 }
   0x5   : > { %s132_s26 = ssub.s32 %s2269_s21, %s2330_s24  ;;  %p145_p0 = scmp.ne.s32.totalorder %s2265_s20, %s2261_s19 }
   0x6   : > { %p133_p1 = scmp.eq.s32.totalorder %s132_s26, 0  ;;  %p146_p2 = scmp.eq.s32.totalorder %s2326_s22, 1 }
   0x7   : > { %p151_p3 = scmp.ne.s32.totalorder %s2261_s19, %s2257_s18  ;;  %p152_p4 = scmp.eq.s32.totalorder %s1703_s23, 1 }
   0x8   : > { %s2341_s27 = scalar_select %p133_p1, %s2265_s20, %s135_s25  }
   0x9   : > { %p2343_p5 = por %p146_p2, %p145_p0  ;;  %p2347_p6 = por %p152_p4, %p151_p3 }
   0xa   : > { %p1706_p7 = scmp.ge.s32.totalorder %s2269_s21, 1  ;;  %p190_p8 = scmp.lt.s32.totalorder %s2269_s21, 3 }
   0xc   : > { %p191_p9 = pnand %p1706_p7, %p190_p8 }
   0xd   : > { %v2083_v0 = vld [vmem:[%s2817_s1 + $0x40] sm:$0xff] (!%p191_p9)   ;;  %v2087_v4 = vld [vmem:[%s2817_s1 + $0x48] sm:$0xff] (!%p191_p9)   ;;  %v2091_v8 = vld [vmem:[%s2817_s1 + $0x50] sm:$0xff] (!%p191_p9)   ;;  %p218_p10 = scmp.lt.s32.totalorder (!%p191_p9), %s2326_s22, 1  ;;  %vm2272_vm0 = vmmov (!%p191_p9), 0   ;;  %vm1189_vm1 = vcmask (!%p191_p9), 1041408  }
   0xe   : > { %194 = sbr.rel (%p191_p9) target bundleno = 593 (0x251), region = 40  ;;  %v2084_v1 = vld [vmem:[%s2817_s1] sm:$0xff] (!%p191_p9)   ;;  %1840 = vmatprep.subr.bf16.mxu0 (!%p191_p9), %v2083_v0  ;;  %v2088_v5 = vld [vmem:[%s2817_s1 + $0x8] sm:$0xff] (!%p191_p9)   ;;  %v2092_v9 = vld [vmem:[%s2817_s1 + $0x10] sm:$0xff] (!%p191_p9)   ;;  %vm1190_vm2 = vcmask (!%p191_p9), 1042432   ;;  %vm1185_vm3 = vcmask (!%p191_p9), 433152  }
   0xf   : > { %v2085_v2 = vld [vmem:[%s2817_s1 + $0xc0] sm:$0xff] (!%p191_p9)   ;;  %1841 = vmatpush3.bf16.msra.mxu0 (!%p191_p9), %v2084_v1  ;;  %v2089_v6 = vld [vmem:[%s2817_s1 + $0xc8] sm:$0xff] (!%p191_p9)   ;;  %v2093_v10 = vld [vmem:[%s2817_s1 + $0xd0] sm:$0xff] (!%p191_p9)   ;;  %s215_s16 = sand.u32 (!%p191_p9), 1, %s2261_s19   ;;  %s1837_s23 = sshll.u32 (!%p191_p9), %s2326_s22, 7 }
  0x10   : > { %v2086_v3 = vld [vmem:[%s2817_s1 + $0x80] sm:$0xff] (!%p191_p9)   ;;  %1862 = vmatprep.subr.bf16.mxu1 (!%p191_p9), %v2085_v2  ;;  %1842 = vmatprep.subr.bf16.mxu0 (!%p191_p9), %v2087_v4  ;;  %v2090_v7 = vld [vmem:[%s2817_s1 + $0x88] sm:$0xff] (!%p191_p9)   ;;  %v2094_v11 = vld [vmem:[%s2817_s1 + $0x90] sm:$0xff] (!%p191_p9)   ;;  %s1707_s17 = sshll.u32 (!%p191_p9), %s215_s16, 3  ;;  %s1631_s9 = scalar_lea.sflag (!%p191_p9), [#allocation3], %s215_s16 }
  0x11   : > { %1863 = vmatpush3.bf16.msra.mxu1 (!%p191_p9), %v2086_v3  ;;  %v2095_v12 = vld [vmem:[%s2817_s1 + $0x58] sm:$0xff] (!%p191_p9)   ;;  %v2099_v16 = vld [vmem:[%s2817_s1 + $0x60] sm:$0xff] (!%p191_p9)   ;;  %v2103_v20 = vld [vmem:[%s2817_s1 + $0x68] sm:$0xff] (!%p191_p9)   ;;  %s217_s26 = scalar_lea.vmem (!%p191_p9), [#allocation2], %s1707_s17  ;;  %s2274_s10 = smov (!%p191_p9), [#allocation2]  }
  0x12   : > { %1864 = vmatprep.subr.bf16.mxu1 (!%p191_p9), %v2089_v6  ;;  %v2096_v13 = vld [vmem:[%s2817_s1 + $0x18] sm:$0xff] (!%p191_p9)   ;;  %v2100_v17 = vld [vmem:[%s2817_s1 + $0x20] sm:$0xff] (!%p191_p9)   ;;  %v2104_v21 = vld [vmem:[%s2817_s1 + $0x28] sm:$0xff] (!%p191_p9)   ;;  %s1644_s30 = sshll.u32 (!%p191_p9), %s217_s26, 4  ;;  %s2211_s11 = sshll.u32 (!%p191_p9), %s2274_s10, 4  ;;  %s2776_s30 = int_to_ptr.vmem [resolvable:$true] %s1644_s30  ;;  %s2212_s11 = int_to_ptr.vmem [resolvable:$false] %s2211_s11 }
  0x13   : > { %1843 = vmatpush3.bf16.msra.mxu0 (!%p191_p9), %v2088_v5  ;;  %v2097_v14 = vld [vmem:[%s2817_s1 + $0xd8] sm:$0xff] (!%p191_p9)   ;;  %v2101_v18 = vld [vmem:[%s2817_s1 + $0xe0] sm:$0xff] (!%p191_p9)   ;;  %v2105_v22 = vld [vmem:[%s2817_s1 + $0xe8] sm:$0xff] (!%p191_p9)   ;;  %s2213_s12 = scalar_lea.vmem (!%p191_p9), %s2212_s11, 256  ;;  %p2214_p0 = scmp.lt.s32.totalorder (!%p191_p9), %s2776_s30, %s2212_s11 }
  0x14   : > { %1844 = vmatprep.subr.bf16.mxu0 (!%p191_p9), %v2091_v8  ;;  %v2098_v15 = vld [vmem:[%s2817_s1 + $0x98] sm:$0xff] (!%p191_p9)   ;;  %v2102_v19 = vld [vmem:[%s2817_s1 + $0xa0] sm:$0xff] (!%p191_p9)   ;;  %v2106_v23 = vld [vmem:[%s2817_s1 + $0xa8] sm:$0xff] (!%p191_p9)  }
  0x15   : > { %1865 = vmatpush3.bf16.msra.mxu1 %v2090_v7  ;;  %s219_s15 = scalar_select %p218_p10, %s2326_s22, 1  ;;  %v2107_v24 = vld [vmem:[%s2817_s1 + $0x70] sm:$0xff]   ;;  %v2111_v28 = vld [vmem:[%s2817_s1 + $0x78] sm:$0xff]   ;;  %v2115_v36 = vld [vmem:[%s2817_s1 + $0x140] sm:$0xff]  }
  0x16   : > { %1866 = vmatprep.subr.bf16.mxu1 %v2093_v10  ;;  %v2108_v25 = vld [vmem:[%s2817_s1 + $0x30] sm:$0xff]   ;;  %v2112_v29 = vld [vmem:[%s2817_s1 + $0x38] sm:$0xff]   ;;  %v2116_v39 = vld [vmem:[%s2817_s1 + $0x100] sm:$0xff]   ;;  %s2207_s22 = scalar_lea.vmem %s2776_s30, 128 }
  0x17   : > { %1845 = vmatpush3.bf16.msra.mxu0 %v2092_v9  ;;  %s2040_s8 = smul.u32 120, %s219_s15  ;;  %v2109_v26 = vld [vmem:[%s2817_s1 + $0xf0] sm:$0xff]   ;;  %v2113_v30 = vld [vmem:[%s2817_s1 + $0xf8] sm:$0xff]   ;;  %v2117_v42 = vld [vmem:[%s2817_s1 + $0x1c0] sm:$0xff]   ;;  %p2208_p11 = scmp.ne.s32.totalorder %s2776_s30, %s2207_s22 }
  0x18   : > { %1846 = vmatprep.subr.bf16.mxu0 %v2095_v12  ;;  %v2110_v27 = vld [vmem:[%s2817_s1 + $0xb0] sm:$0xff]   ;;  %v2114_v33 = vld [vmem:[%s2817_s1 + $0xb8] sm:$0xff]   ;;  %v2118_v43 = vld [vmem:[%s2817_s1 + $0x180] sm:$0xff]   ;;  %p2215_p1 = scmp.lt.s32.totalorder %s2213_s12, %s2207_s22 }
  0x19   : > { %1867 = vmatpush3.bf16.msra.mxu1 %v2094_v11  ;;  %s2445_s25 = scalar_lea.vmem %s2816_s0, %s2040_s8  ;;  %v2119_v44 = vld [vmem:[%s2817_s1 + $0x148] sm:$0xff]   ;;  %v2123_v48 = vld [vmem:[%s2817_s1 + $0x150] sm:$0xff]   ;;  %v2127_v52 = vld [vmem:[%s2817_s1 + $0x158] sm:$0xff]   ;;  %s2774_s8 = scalar_lea.hbm %s2821_s5, %s1837_s23 }
  0x1a   : > { %1868 = vmatprep.subr.bf16.mxu1 %v2097_v14  ;;  %v225_v31 = vld [vmem:[%s2445_s25 + $0x8] sm:$0xff]  ;;  %v224_v34 = vld [vmem:[%s2445_s25] sm:$0xff]  ;;  %v227_v37 = vld [vmem:[%s2445_s25 + $0x18] sm:$0xff]  ;;  %p2209_p12 = pnand %p2208_p11, %p2343_p5  ;;  %p2216_p2 = por %p2215_p1, %p2214_p0 }
  0x1b   : > { %1847 = vmatpush3.bf16.msra.mxu0 %v2096_v13  ;;  %v240_v32 = vpack.c.bf16 %v225_v31, %v225_v31  ;;  %v239_v35 = vpack.c.bf16 %v224_v34, %v224_v34  ;;  %v242_v38 = vpack.c.bf16 %v227_v37, %v227_v37  ;;  %v226_v40 = vld [vmem:[%s2445_s25 + $0x10] sm:$0xff]  ;;  %v2120_v45 = vld [vmem:[%s2817_s1 + $0x108] sm:$0xff]   ;;  %v2128_v53 = vld [vmem:[%s2817_s1 + $0x118] sm:$0xff]  }
  0x1c   : > { %1848 = vmatprep.subr.bf16.mxu0 %v2099_v16  ;;  %v241_v41 = vpack.c.bf16 %v226_v40, %v226_v40  ;;  %v2121_v46 = vld [vmem:[%s2817_s1 + $0x1c8] sm:$0xff]   ;;  %v2124_v49 = vld [vmem:[%s2817_s1 + $0x110] sm:$0xff]   ;;  %v2129_v54 = vld [vmem:[%s2817_s1 + $0x1d8] sm:$0xff]   ;;  %p2210_p13 = pneg %p2209_p12 }
  0x1d   : > { %1869 = vmatpush3.bf16.msra.mxu1 %v2098_v15  ;;  %1228 = vmatprep.mubr.bf16.mxu0 %v240_v32  ;;  %v2122_v47 = vld [vmem:[%s2817_s1 + $0x188] sm:$0xff]   ;;  %v2125_v50 = vld [vmem:[%s2817_s1 + $0x1d0] sm:$0xff]   ;;  %v2130_v55 = vld [vmem:[%s2817_s1 + $0x198] sm:$0xff]  }
  0x1e   : > { %1870 = vmatprep.subr.bf16.mxu1 %v2101_v18  ;;  %1268 = vmatprep.mubr.bf16.mxu1 %v242_v38  ;;  %v2126_v51 = vld [vmem:[%s2817_s1 + $0x190] sm:$0xff]   ;;  %v2131_v56 = vld [vmem:[%s2817_s1 + $0x160] sm:$0xff]   ;;  %v2135_v60 = vld [vmem:[%s2817_s1 + $0x168] sm:$0xff]   ;;  %p2217_p3 = pnand %p2216_p2, %p2210_p13 }
  0x1f   : > { %1849 = vmatpush3.bf16.msra.mxu0 %v2100_v17  ;;  %v2132_v57 = vld [vmem:[%s2817_s1 + $0x120] sm:$0xff]   ;;  %v2136_v61 = vld [vmem:[%s2817_s1 + $0x128] sm:$0xff]   ;;  %v2139_v0 = vld [vmem:[%s2817_s1 + $0x170] sm:$0xff]  }
  0x20   : > { %1850 = vmatprep.subr.bf16.mxu0 %v2103_v20  ;;  %v2133_v58 = vld [vmem:[%s2817_s1 + $0x1e0] sm:$0xff]   ;;  %v2137_v62 = vld [vmem:[%s2817_s1 + $0x1e8] sm:$0xff]   ;;  %v2140_v1 = vld [vmem:[%s2817_s1 + $0x130] sm:$0xff]  }
  0x21   : > { %1871 = vmatpush3.bf16.msra.mxu1 %v2102_v19  ;;  %v2134_v59 = vld [vmem:[%s2817_s1 + $0x1a0] sm:$0xff]   ;;  %v2138_v63 = vld [vmem:[%s2817_s1 + $0x1a8] sm:$0xff]   ;;  %v2141_v2 = vld [vmem:[%s2817_s1 + $0x1f0] sm:$0xff]  }
  0x22   : > { %1872 = vmatprep.subr.bf16.mxu1 %v2105_v22  ;;  %v2142_v3 = vld [vmem:[%s2817_s1 + $0x1b0] sm:$0xff]   ;;  %v2143_v4 = vld [vmem:[%s2817_s1 + $0x178] sm:$0xff]   ;;  %v229_v7 = vld [vmem:[%s2445_s25 + $0x28] sm:$0xff] }
  0x23   : > { %1851 = vmatpush3.bf16.msra.mxu0 %v2104_v21  ;;  %v2144_v5 = vld [vmem:[%s2817_s1 + $0x138] sm:$0xff]   ;;  %v244_v8 = vpack.c.bf16 %v229_v7, %v229_v7  ;;  %v228_v10 = vld [vmem:[%s2445_s25 + $0x20] sm:$0xff]  ;;  %v230_v16 = vld [vmem:[%s2445_s25 + $0x30] sm:$0xff] }
  0x24   : > { %1852 = vmatprep.subr.bf16.mxu0 %v2107_v24  ;;  %v2145_v6 = vld [vmem:[%s2817_s1 + $0x1f8] sm:$0xff]   ;;  %v243_v11 = vpack.c.bf16 %v228_v10, %v228_v10  ;;  %v2147_v12 = vld [vmem:[%s2817_s1 + $0x240] sm:$0xff]   ;;  %v245_v17 = vpack.c.bf16 %v230_v16, %v230_v16  ;;  %v2151_v20 = vld [vmem:[%s2817_s1 + $0x248] sm:$0xff]  }
  0x25   : > { %1873 = vmatpush3.bf16.msra.mxu1 %v2106_v23  ;;  %v2146_v9 = vld [vmem:[%s2817_s1 + $0x1b8] sm:$0xff]   ;;  %v2148_v15 = vld [vmem:[%s2817_s1 + $0x200] sm:$0xff]   ;;  %v2152_v21 = vld [vmem:[%s2817_s1 + $0x208] sm:$0xff]  }
  0x26   : > { %1874 = vmatprep.subr.bf16.mxu1 %v2109_v26  ;;  %v231_v13 = vld [vmem:[%s2445_s25 + $0x38] sm:$0xff]  ;;  %v2149_v18 = vld [vmem:[%s2817_s1 + $0x2c0] sm:$0xff]   ;;  %v2153_v22 = vld [vmem:[%s2817_s1 + $0x2c8] sm:$0xff]  }
  0x27   : > { %1853 = vmatpush3.bf16.msra.mxu0 %v2108_v25  ;;  %v246_v14 = vpack.c.bf16 %v231_v13, %v231_v13  ;;  %v2150_v19 = vld [vmem:[%s2817_s1 + $0x280] sm:$0xff]   ;;  %v2154_v23 = vld [vmem:[%s2817_s1 + $0x288] sm:$0xff]   ;;  %v2155_v24 = vld [vmem:[%s2817_s1 + $0x250] sm:$0xff]  }
  0x28   : > { %1854 = vmatprep.subr.bf16.mxu0 %v2111_v28  ;;  %v2156_v25 = vld [vmem:[%s2817_s1 + $0x210] sm:$0xff]   ;;  %v2159_v28 = vld [vmem:[%s2817_s1 + $0x258] sm:$0xff]   ;;  %v2163_v32 = vld [vmem:[%s2817_s1 + $0x260] sm:$0xff]  }
  0x29   : > { %1875 = vmatpush3.bf16.msra.mxu1 %v2110_v27  ;;  %v2157_v26 = vld [vmem:[%s2817_s1 + $0x2d0] sm:$0xff]   ;;  %v2162_v31 = vld [vmem:[%s2817_s1 + $0x298] sm:$0xff]   ;;  %v2165_v34 = vld [vmem:[%s2817_s1 + $0x2e0] sm:$0xff]  }
  0x2a   : > { %1876 = vmatprep.subr.bf16.mxu1 %v2113_v30  ;;  %v2158_v27 = vld [vmem:[%s2817_s1 + $0x290] sm:$0xff]   ;;  %v2161_v30 = vld [vmem:[%s2817_s1 + $0x2d8] sm:$0xff]   ;;  %v2168_v37 = vld [vmem:[%s2817_s1 + $0x228] sm:$0xff]  }
  0x2b   : > { %1855 = vmatpush3.bf16.msra.mxu0 %v2112_v29  ;;  %v2160_v29 = vld [vmem:[%s2817_s1 + $0x218] sm:$0xff]   ;;  %v2169_v38 = vld [vmem:[%s2817_s1 + $0x2e8] sm:$0xff]   ;;  %v2171_v40 = vld [vmem:[%s2817_s1 + $0x270] sm:$0xff]  }
  0x2c   : > { %1884 = vmatprep.subr.bf16.mxu0 %v2115_v36  ;;  %v2167_v36 = vld [vmem:[%s2817_s1 + $0x268] sm:$0xff]   ;;  %v2193_v13 = vld [vmem:[%s2817_s1 + $0x370] sm:$0xff]  }
  0x2d   : > { %1877 = vmatpush3.bf16.msra.mxu1 %v2114_v33  ;;  %v2164_v33 = vld [vmem:[%s2817_s1 + $0x220] sm:$0xff]   ;;  %v2194_v16 = vld [vmem:[%s2817_s1 + $0x330] sm:$0xff]  }
  0x2e   : > { %1229 = vmatmul.mubr.bf16.vlgmr.msra.gmra.mrb[0].mxu0 %v239_v35  ;;  %1906 = vmatprep.subr.bf16.mxu1 %v2117_v42  ;;  %v2166_v35 = vld [vmem:[%s2817_s1 + $0x2a0] sm:$0xff]   ;;  %v2173_v42 = vld [vmem:[%s2817_s1 + $0x2f0] sm:$0xff]  }
  0x2f   : > { %1885 = vmatpush3.bf16.msra.mxu0 %v2116_v39  ;;  %1308 = vmatprep.mubr.bf16.mxu0 %v244_v8  ;;  %v2170_v39 = vld [vmem:[%s2817_s1 + $0x2a8] sm:$0xff]   ;;  %v2195_v8 = vld [vmem:[%s2817_s1 + $0x390] sm:$0xff]  }
  0x30   : > { %1269 = vmatmul.mubr.bf16.vlgmr.msra.gmra.mrb[0].mxu1 %v241_v41  ;;  %1886 = vmatprep.subr.bf16.mxu0 %v2119_v44  ;;  %v2172_v41 = vld [vmem:[%s2817_s1 + $0x230] sm:$0xff]   ;;  %v2175_v44 = vld [vmem:[%s2817_s1 + $0x278] sm:$0xff]  }
  0x31   : > { %1907 = vmatpush3.bf16.msra.mxu1 %v2118_v43  ;;  %1348 = vmatprep.mubr.bf16.mxu1 %v246_v14  ;;  %v2174_v43 = vld [vmem:[%s2817_s1 + $0x2b0] sm:$0xff]  }
  0x32   : > { %1908 = vmatprep.subr.bf16.mxu1 %v2121_v46  ;;  %v2177_v46 = vld [vmem:[%s2817_s1 + $0x2f8] sm:$0xff]  }
  0x33   : > { %1887 = vmatpush3.bf16.msra.mxu0 %v2120_v45  ;;  %v2176_v45 = vld [vmem:[%s2817_s1 + $0x238] sm:$0xff]  }
  0x34   : > { %1888 = vmatprep.subr.bf16.mxu0 %v2123_v48 }
  0x35   : > { %1909 = vmatpush3.bf16.msra.mxu1 %v2122_v47  ;;  %v233_v47 = vld [vmem:[%s2445_s25 + $0x48] sm:$0xff] }
  0x36   : > { %1910 = vmatprep.subr.bf16.mxu1 %v2125_v50  ;;  %v248_v48 = vpack.c.bf16 %v233_v47, %v233_v47  ;;  %v232_v50 = vld [vmem:[%s2445_s25 + $0x40] sm:$0xff] }
  0x37   : > { %1889 = vmatpush3.bf16.msra.mxu0 %v2124_v49  ;;  %v2178_v49 = vld [vmem:[%s2817_s1 + $0x2b8] sm:$0xff]  }
  0x38   : > { %1890 = vmatprep.subr.bf16.mxu0 %v2127_v52  ;;  %v2179_v52 = vld [vmem:[%s2817_s1 + $0x340] sm:$0xff]  }
  0x39   : > { %1911 = vmatpush3.bf16.msra.mxu1 %v2126_v51  ;;  %v247_v51 = vpack.c.bf16 %v232_v50, %v232_v50 }
  0x3a   : > { %1912 = vmatprep.subr.bf16.mxu1 %v2129_v54 }
  0x3b   : > { %1891 = vmatpush3.bf16.msra.mxu0 %v2128_v53  ;;  %v235_v53 = vld [vmem:[%s2445_s25 + $0x58] sm:$0xff] }
  0x3c   : > { %1892 = vmatprep.subr.bf16.mxu0 %v2131_v56  ;;  %v250_v54 = vpack.c.bf16 %v235_v53, %v235_v53  ;;  %v234_v56 = vld [vmem:[%s2445_s25 + $0x50] sm:$0xff] }
  0x3d   : > { %1913 = vmatpush3.bf16.msra.mxu1 %v2130_v55  ;;  %v2180_v55 = vld [vmem:[%s2817_s1 + $0x300] sm:$0xff]  }
  0x3e   : > { %1914 = vmatprep.subr.bf16.mxu1 %v2133_v58  ;;  %v249_v58 = vpack.c.bf16 %v234_v56, %v234_v56 }
  0x3f   : > { %1893 = vmatpush3.bf16.msra.mxu0 %v2132_v57  ;;  %v2271_v57 = vmov 0.0  }
  0x40   : > { %1894 = vmatprep.subr.bf16.mxu0 %v2135_v60  ;;  %v2182_v60 = vld [vmem:[%s2817_s1 + $0x308] sm:$0xff]  }
  0x41   : > { %1915 = vmatpush3.bf16.msra.mxu1 %v2134_v59  ;;  %v2181_v59 = vld [vmem:[%s2817_s1 + $0x348] sm:$0xff]  }
  0x42   : > { %1916 = vmatprep.subr.bf16.mxu1 %v2137_v62  ;;  %v2184_v62 = vld [vmem:[%s2817_s1 + $0x310] sm:$0xff]  }
  0x43   : > { %1895 = vmatpush3.bf16.msra.mxu0 %v2136_v61  ;;  %v2183_v61 = vld [vmem:[%s2817_s1 + $0x350] sm:$0xff]  }
  0x44   : > { %1896 = vmatprep.subr.bf16.mxu0 %v2139_v0  ;;  %v2189_v0 = vld [vmem:[%s2817_s1 + $0x380] sm:$0xff]  }
  0x45   : > { %1917 = vmatpush3.bf16.msra.mxu1 %v2138_v63  ;;  %v2185_v63 = vld [vmem:[%s2817_s1 + $0x358] sm:$0xff]  }
  0x46   : > { %1918 = vmatprep.subr.bf16.mxu1 %v2141_v2  ;;  %v2187_v2 = vld [vmem:[%s2817_s1 + $0x360] sm:$0xff]  }
  0x47   : > { %1897 = vmatpush3.bf16.msra.mxu0 %v2140_v1  ;;  %v2186_v1 = vld [vmem:[%s2817_s1 + $0x318] sm:$0xff]  }
  0x48   : > { %1898 = vmatprep.subr.bf16.mxu0 %v2143_v4  ;;  %v2188_v4 = vld [vmem:[%s2817_s1 + $0x320] sm:$0xff]  }
  0x49   : > { %1919 = vmatpush3.bf16.msra.mxu1 %v2142_v3  ;;  %v2192_v3 = vld [vmem:[%s2817_s1 + $0x388] sm:$0xff]  }
  0x4a   : > { %1920 = vmatprep.subr.bf16.mxu1 %v2145_v6  ;;  %v2273_v6 = vmov 65535  }
  0x4b   : > { %1899 = vmatpush3.bf16.msra.mxu0 %v2144_v5  ;;  %v2190_v5 = vld [vmem:[%s2817_s1 + $0x368] sm:$0xff]   ;;  %v1191_v7 = vsel %vm1189_vm1, 4294967295, %v2273_v6 }
  0x4c   : > { %1928 = vmatprep.subr.bf16.mxu0 %v2147_v12  ;;  %v1192_v10 = vsel %vm1190_vm2, %v1191_v7, 0  ;;  %v2198_v12 = vld [vmem:[%s2817_s1 + $0x398] ss:$0 sps:$4 sm:$0x77]  }
  0x4d   : > { %1921 = vmatpush3.bf16.msra.mxu1 %v2146_v9  ;;  %v2191_v9 = vld [vmem:[%s2817_s1 + $0x328] sm:$0xff]  }
  0x4e   : > { %1309 = vmatmul.mubr.bf16.vlgmr.msra.gmra.mrb[4].mxu0 %v243_v11  ;;  %1950 = vmatprep.subr.bf16.mxu1 %v2149_v18  ;;  %v237_v11 = vld [vmem:[%s2445_s25 + $0x68] sm:$0xff]  ;;  %v2196_v18 = vld [vmem:[%s2817_s1 + $0x378] sm:$0xff]  }
  0x4f   : > { %1929 = vmatpush3.bf16.msra.mxu0 %v2148_v15  ;;  %1388 = vmatprep.mubr.bf16.mxu0 %v248_v48  ;;  %v252_v14 = vpack.c.bf16 %v237_v11, %v237_v11  ;;  %v238_v15 = vld [vmem:[%s2445_s25 + $0x70] sm:$0xff] }
  0x50   : > { %1349 = vmatmul.mubr.bf16.vlgmr.msra.gmra.mrb[4].mxu1 %v245_v17  ;;  %1930 = vmatprep.subr.bf16.mxu0 %v2151_v20  ;;  %v1194_v17 = vand.u32 %v2198_v12, %v1192_v10  ;;  %v2197_v20 = vld [vmem:[%s2817_s1 + $0x338] sm:$0xff]  }
  0x51   : > { %1951 = vmatpush3.bf16.msra.mxu1 %v2150_v19  ;;  %1428 = vmatprep.mubr.bf16.mxu1 %v250_v54  ;;  %v253_v19 = vpack.c.bf16 %v238_v15, %v238_v15 }
  0x52   : > { %1952 = vmatprep.subr.bf16.mxu1 %v2153_v22 }
  0x53   : > { %1931 = vmatpush3.bf16.msra.mxu0 %v2152_v21  ;;  %v236_v21 = vld [vmem:[%s2445_s25 + $0x60] sm:$0xff] }
  0x54   : > { %1932 = vmatprep.subr.bf16.mxu0 %v2155_v24  ;;  %v251_v22 = vpack.c.bf16 %v236_v21, %v236_v21  ;;  %v2200_v24 = vld [vmem:[%s2819_s3 + $0x8] sm:$0xff]  }
  0x55   : > { %1953 = vmatpush3.bf16.msra.mxu1 %v2154_v23  ;;  %v2199_v23 = vld [vmem:[%s2819_s3] sm:$0xff]  }
  0x56   : > { %1954 = vmatprep.subr.bf16.mxu1 %v2157_v26  ;;  %v2202_v26 = vld [vmem:[%s2819_s3 + $0x18] sm:$0xff]  }
  0x57   : > { %1933 = vmatpush3.bf16.msra.mxu0 %v2156_v25  ;;  %v2201_v25 = vld [vmem:[%s2819_s3 + $0x10] sm:$0xff]  }
  0x58   : > { %1934 = vmatprep.subr.bf16.mxu0 %v2159_v28  ;;  %v2204_v28 = vld [vmem:[%s2819_s3 + $0x28] sm:$0xff]  }
  0x59   : > { %1955 = vmatpush3.bf16.msra.mxu1 %v2158_v27  ;;  %v2203_v27 = vld [vmem:[%s2819_s3 + $0x20] sm:$0xff]  }
  0x5a   : > { %1956 = vmatprep.subr.bf16.mxu1 %v2161_v30  ;;  %v2206_v30 = vld [vmem:[%s2819_s3 + $0x38] sm:$0xff]  }
  0x5b   : > { %1935 = vmatpush3.bf16.msra.mxu0 %v2160_v29  ;;  %v2205_v29 = vld [vmem:[%s2819_s3 + $0x30] sm:$0xff]  }
  0x5c   : > { %1936 = vmatprep.subr.bf16.mxu0 %v2163_v32  ;;  %v1709_v32 = vld [vmem:[%s2818_s2] ss:$0 sm:$0xff] }
  0x5d   : > { %1957 = vmatpush3.bf16.msra.mxu1 %v2162_v31 }
  0x5e   : > { %1958 = vmatprep.subr.bf16.mxu1 %v2165_v34 }
  0x5f   : > { %1937 = vmatpush3.bf16.msra.mxu0 %v2164_v33 }
  0x60   : > { %1938 = vmatprep.subr.bf16.mxu0 %v2167_v36 }
  0x61   : > { %1959 = vmatpush3.bf16.msra.mxu1 %v2166_v35 }
  0x62   : > { %1960 = vmatprep.subr.bf16.mxu1 %v2169_v38 }
  0x63   : > { %1939 = vmatpush3.bf16.msra.mxu0 %v2168_v37 }
  0x64   : > { %1940 = vmatprep.subr.bf16.mxu0 %v2171_v40 }
  0x65   : > { %1961 = vmatpush3.bf16.msra.mxu1 %v2170_v39 }
  0x66   : > { %1962 = vmatprep.subr.bf16.mxu1 %v2173_v42 }
  0x67   : > { %1941 = vmatpush3.bf16.msra.mxu0 %v2172_v41 }
  0x68   : > { %1942 = vmatprep.subr.bf16.mxu0 %v2175_v44 }
  0x69   : > { %1963 = vmatpush3.bf16.msra.mxu1 %v2174_v43 }
  0x6a   : > { %1964 = vmatprep.subr.bf16.mxu1 %v2177_v46 }
  0x6b   : > { %1943 = vmatpush3.bf16.msra.mxu0 %v2176_v45 }
  0x6c   : > { %1972 = vmatprep.subr.bf16.mxu0 %v2179_v52 }
  0x6d   : > { %1965 = vmatpush3.bf16.msra.mxu1 %v2178_v49 }
  0x6e   : > { %2008 = vmatprep.subr.bf16.mxu1 %v2271_v57  ;;  %1389 = vmatmul.mubr.bf16.vlgmr.msra.gmra.mrb[8].mxu0 %v247_v51 }
  0x6f   : > { %1973 = vmatpush3.bf16.msra.mxu0 %v2180_v55  ;;  %1468 = vmatprep.mubr.bf16.mxu0 %v252_v14 }
  0x70   : > { %1429 = vmatmul.mubr.bf16.vlgmr.msra.gmra.mrb[8].mxu1 %v249_v58  ;;  %1974 = vmatprep.subr.bf16.mxu0 %v2181_v59 }
  0x71   : > { %2016 = vmatprep.mubr.msk.bf16.mxu1 %vm2272_vm0, %v2271_v57  ;;  %2009 = vmatpush3.bf16.msra.mxu1 %v2189_v0 }
  0x72   : > { %2010 = vmatprep.subr.bf16.mxu1 %v2271_v57 }
  0x73   : > { %1975 = vmatpush3.bf16.msra.mxu0 %v2182_v60 }
  0x74   : > { %1976 = vmatprep.subr.bf16.mxu0 %v2183_v61 }
  0x75   : > { %2011 = vmatpush3.bf16.msra.mxu1 %v2192_v3 }
  0x76   : > { %2012 = vmatprep.subr.bf16.mxu1 %v2271_v57 }
  0x77   : > { %1977 = vmatpush3.bf16.msra.mxu0 %v2184_v62 }
  0x78   : > { %1978 = vmatprep.subr.bf16.mxu0 %v2185_v63 }
  0x79   : > { %2013 = vmatpush3.bf16.msra.mxu1 %v2195_v8 }
  0x7a   : > { %2014 = vmatprep.subr.bf16.mxu1 %v2271_v57 }
  0x7b   : > { %1979 = vmatpush3.bf16.msra.mxu0 %v2186_v1 }
  0x7c   : > { %1980 = vmatprep.subr.bf16.mxu0 %v2187_v2 }
  0x7d   : > { %2015 = vmatpush3.bf16.msra.mxu1 %v1194_v17  ;;  %v1827_v17 = vld [vmem:[%s2820_s4] ss:$0 sm:$0xff] }
  0x7e   : > { %2020 = vmatprep.subr.bf16.mxu1 %v2271_v57 }
  0x7f   : > { %1981 = vmatpush3.bf16.msra.mxu0 %v2188_v4 }
  0x80   : > { %1982 = vmatprep.subr.bf16.mxu0 %v2190_v5  ;;  %2017 = vmatmul.mubr.msk.bf16.vlgmr.msra.gmra.mrb[12].mxu1 %vm1185_vm3, %v253_v19 }
  0x81   : > { %2036 = vmatprep.mubr.msk.bf16.mxu1 %vm2272_vm0, %v2271_v57  ;;  %2021 = vmatpush3.bf16.msra.mxu1 %v2199_v23 }
  0x82   : > { %2022 = vmatprep.subr.bf16.mxu1 %v2271_v57 }
  0x83   : > { %1983 = vmatpush3.bf16.msra.mxu0 %v2191_v9 }
  0x84   : > { %1984 = vmatprep.subr.bf16.mxu0 %v2193_v13 }
  0x85   : > { %2023 = vmatpush3.bf16.msra.mxu1 %v2200_v24 }
  0x86   : > { %2024 = vmatprep.subr.bf16.mxu1 %v2271_v57 }
  0x87   : > { %1985 = vmatpush3.bf16.msra.mxu0 %v2194_v16 }
  0x88   : > { %1986 = vmatprep.subr.bf16.mxu0 %v2196_v18 }
  0x89   : > { %2025 = vmatpush3.bf16.msra.mxu1 %v2201_v25 }
  0x8a   : > { %2026 = vmatprep.subr.bf16.mxu1 %v2271_v57 }
  0x8b   : > { %1987 = vmatpush3.bf16.msra.mxu0 %v2197_v20 }
  0x8d   : > { %2027 = vmatpush3.bf16.msra.mxu1 %v2202_v26 }
  0x8e   : > { %1469 = vmatmul.mubr.bf16.vlgmr.msra.gmra.mrb[12].mxu0 %v251_v22  ;;  %2028 = vmatprep.subr.bf16.mxu1 %v2271_v57 }
  0x91   : > { %2029 = vmatpush3.bf16.msra.mxu1 %v2203_v27 }
  0x92   : > { %2030 = vmatprep.subr.bf16.mxu1 %v2271_v57 }
  0x95   : > { %2031 = vmatpush3.bf16.msra.mxu1 %v2204_v28 }
  0x96   : > { %2032 = vmatprep.subr.bf16.mxu1 %v2271_v57 }
  0x99   : > { %2033 = vmatpush3.bf16.msra.mxu1 %v2205_v29 }
  0x9a   : > { %2034 = vmatprep.subr.bf16.mxu1 %v2271_v57 }
  0x9d   : > { %2035 = vmatpush3.bf16.msra.mxu1 %v2206_v30 }
 0x101   : > { %v1856_v31 = vpop.f32.mrb[0].mxu0 }
 0x102   : > { %v1857_v33 = vpop.f32.mrb[1].mxu0 }
 0x103   : > { %v1858_v34 = vadd.f32 %v1857_v33, %v1856_v31  ;;  %v1859_v35 = vpop.f32.mrb[2].mxu0  ;;  %v1878_v36 = vpop.f32.mrb[0].mxu1 }
 0x104   : > { %v1860_v37 = vpop.f32.mrb[3].mxu0  ;;  %v1879_v39 = vpop.f32.mrb[1].mxu1 }
 0x105   : > { %v1231_v38 = vadd.f32 %v1858_v34, %v1709_v32  ;;  %v1880_v40 = vadd.f32 %v1879_v39, %v1878_v36  ;;  %v1881_v41 = vpop.f32.mrb[2].mxu1 }
 0x106   : > { %v1882_v42 = vpop.f32.mrb[3].mxu1 }
 0x107   : > { %v1271_v43 = vadd.f32 %v1880_v40, %v1231_v38 }
 0x121   : > { %v1900_v44 = vpop.f32.mrb[4].mxu0 }
 0x122   : > { %v1901_v45 = vpop.f32.mrb[5].mxu0 }
 0x123   : > { %v1902_v46 = vadd.f32 %v1901_v45, %v1900_v44  ;;  %v1903_v47 = vpop.f32.mrb[6].mxu0  ;;  %v1922_v48 = vpop.f32.mrb[4].mxu1 }
 0x124   : > { %v1904_v49 = vpop.f32.mrb[7].mxu0  ;;  %v1923_v51 = vpop.f32.mrb[5].mxu1 }
 0x125   : > { %v1311_v50 = vadd.f32 %v1902_v46, %v1271_v43  ;;  %v1924_v52 = vadd.f32 %v1923_v51, %v1922_v48  ;;  %v1925_v53 = vpop.f32.mrb[6].mxu1 }
 0x126   : > { %v1926_v54 = vpop.f32.mrb[7].mxu1 }
 0x127   : > { %v1351_v55 = vadd.f32 %v1924_v52, %v1311_v50 }
 0x141   : > { %v1944_v56 = vpop.f32.mrb[8].mxu0 }
 0x142   : > { %v1945_v57 = vpop.f32.mrb[9].mxu0 }
 0x143   : > { %v1946_v58 = vadd.f32 %v1945_v57, %v1944_v56  ;;  %v1947_v59 = vpop.f32.mrb[10].mxu0  ;;  %v1966_v60 = vpop.f32.mrb[8].mxu1 }
 0x144   : > { %v1948_v61 = vpop.f32.mrb[11].mxu0  ;;  %v1967_v62 = vpop.f32.mrb[9].mxu1 }
 0x145   : > { %v1391_v63 = vadd.f32 %v1946_v58, %v1351_v55  ;;  %v1968_v0 = vadd.f32 %v1967_v62, %v1966_v60  ;;  %v1969_v1 = vpop.f32.mrb[10].mxu1 }
 0x146   : > { %v1970_v2 = vpop.f32.mrb[11].mxu1 }
 0x147   : > { %v1431_v3 = vadd.f32 %v1968_v0, %v1391_v63 }
 0x153   : > { %v1510_v4 = vpop.f32.mrb[12].mxu1 }
 0x154   : > { %v2018_v5 = vpop.f32.mrb[13].mxu1 }
 0x155   : > { %v1513_v6 = vpop.f32.mrb[14].mxu1 }
 0x156   : > { %v2019_v7 = vpop.f32.mrb[15].mxu1 }
 0x161   : > { %v1988_v8 = vpop.f32.mrb[12].mxu0 }
 0x162   : > { %v1989_v9 = vpop.f32.mrb[13].mxu0 }
 0x163   : > { %v1990_v10 = vadd.f32 %v1989_v9, %v1988_v8  ;;  %v1991_v11 = vpop.f32.mrb[14].mxu0 }
 0x164   : > { %v1992_v12 = vpop.f32.mrb[15].mxu0 }
 0x165   : > { %v1471_v13 = vadd.f32 %v1990_v10, %v1431_v3 }
 0x167   : > { %v1511_v14 = vadd.f32 %v1510_v4, %v1471_v13 }
 0x169   : > { %v1516_v15 = vmax.f32 %v1511_v14, 0.0 }
 0x16b   : > { %v1517_v16 = vpack.c.bf16 %v1516_v15, %v1516_v15 }
 0x16d   : > { %2037 = vmatmul.mubr.bf16.vlgmr.msra.gmra.mrb[16].mxu1 %v1517_v16 }
 0x240   : > { %v1623_v18 = vpop.f32.mrb[16].mxu1 }
 0x241   : > { %v1624_v19 = vadd.f32 %v1827_v17, %v1623_v18  ;;  %v2038_v20 = vpop.f32.mrb[17].mxu1 }
 0x242   : > { %v1626_v21 = vpop.f32.mrb[18].mxu1 }
 0x243   : > { %1629 = vst [vmem:[%s217_s26] sm:$0xff] %v1624_v19  ;;  %v2039_v22 = vpop.f32.mrb[19].mxu1 }
 0x244   : > { %2220 = shalt.err (!%p2217_p3)
}
 0x245   : > { %s2221_s13 = scalar_lea.hbm %s2774_s8, 128  ;;  %s2225_s17 = scalar_lea.hbm %s2821_s5, 256 }
 0x246   : > { %p2222_p4 = scmp.ne.s32.totalorder %s2774_s8, %s2221_s13  ;;  %p2226_p9 = scmp.lt.u32.totalorder %s2774_s8, %s2821_s5 }
 0x247   : > { %p2227_p10 = scmp.lt.u32.totalorder %s2225_s17, %s2221_s13  ;;  %p2229_p12 = scmp.lt.u32.totalorder %s2221_s13, %s2774_s8 }
 0x248   : > { %p2223_p7 = pnand %p2222_p4, %p2343_p5 }
 0x249   : > { %p2228_p11 = por %p2227_p10, %p2226_p9 }
 0x24a   : > { %p2224_p8 = pneg %p2223_p7 }
 0x24b   : > { %p2230_p13 = por %p2229_p12, %p2228_p11 }
 0x24d   : > { %p2231_p0 = pnand %p2230_p13, %p2224_p8 }
 0x24f   : > { %2234 = shalt.err (!%p2231_p0)
}
 0x250   : > { %2041 = dma.vmem_to_hbm [thread:$0]  (%p2343_p5), %s2776_s30, 128, %s2774_s8, %s1631_s9  }
 0x251 PF: > { %p2047_p1 = scmp.ge.s32.totalorder %s2269_s21, 2  ;;  %s1656_s23 = sand.u32 1, %s2257_s18  }
 0x252   : > { %s1657_s26 = scalar_lea.sflag [#allocation3], %s1656_s23 }
 0x253   : > { %p2044_p2 = pnand %p2047_p1, %p2347_p6 }
 0x255   : > { %2252 = dma.done.wait (!%p2044_p2), %s1657_s26, 128  }
 0x256   : > { %2254 = vsyncadd (!%p2044_p2), %s1657_s26, 4294967168  ;;  %p15_p3 = scmp.ge.s32.totalorder %s2330_s24, 4   ;;  %s2824_s18 = smov %s2261_s19 }
 0x257   : > { %s2825_s19 = smov %s2265_s20  ;;  %s2826_s20 = smov %s2341_s27 }
 0x258   : > { %s2827_s21 = smov %s2330_s24  ;;  %17 = sbr.rel (!%p15_p3) target bundleno = 3 (0x3), region = 75 }
 0x25f   :  { %1662 = vsyncpa [#allocation3], 1 }
 0x260   :  { %1664 = vsyncpa [#allocation3 + $0x1], 1 }

</bundles_post_ra>
